<compile_context>
chip_gen: v6e
topology: v6e:2x2x1
jax: 0.10.0
libtpu: 0.0.40
codegen_flags: <defaults>
</compile_context>

<pallas_src>
import functools

import jax
import jax.numpy as jnp
from jax.experimental import pallas as pl
from jax.experimental.pallas import tpu as pltpu


def _cr_kernel(x_ref, t_ref, o_ref, xpad_ref, *, row_start, pad, dilation):
    """One batch element.

    x_ref    : (1, H, W*Cin)         un-padded rows, (W, Cin) packed into lanes
    t_ref    : (KH, W*Cin, Wo*Cout)  per-row-tap banded weights (KW taps and
                                     column zero-padding pre-folded in)
    o_ref    : (1, Ho, Wo*Cout)      lane-dense output block
    xpad_ref : (row_start+H+pad, W*Cin)  VMEM scratch, row-padded image
    """
    KH = t_ref.shape[0]
    H = x_ref.shape[1]
    Ho = o_ref.shape[1]

    # In-kernel zero padding along H — replaces the wrapper-side jnp.pad
    # (which cost a full extra HBM write+read of the padded tensor).
    xpad_ref[...] = jnp.zeros_like(xpad_ref)
    xpad_ref[row_start:row_start + H, :] = x_ref[0]   # aligned row offset

    acc = jnp.zeros((Ho, o_ref.shape[2]), jnp.float32)
    # KH static row taps; each is one lane-dense MXU matmul
    #   (Ho, W*Cin) @ (W*Cin, Wo*Cout)   accumulated in f32.
    for kh in range(KH):
        r0 = row_start - pad + kh * dilation
        lhs = xpad_ref[r0:r0 + Ho, :].astype(t_ref.dtype)
        acc = acc + jnp.dot(lhs, t_ref[kh], preferred_element_type=jnp.float32)

    # Fused ReLU, lane-dense store (last dim Wo*Cout).
    o_ref[0] = jnp.maximum(acc, 0.0).astype(o_ref.dtype)


def _pack_weights(w_hwio, *, W, Wo, pad, dilation, dtype):
    """Fold the KW column taps + column zero-padding into banded matrices.

    T[kh, w_in*Cin + ci, w*Cout + co] = w_hwio[kh, kw, ci, co]
        where w_in = w + kw*dilation - pad, only if 0 <= w_in < W (else 0),
    so that  out[h, w*Cout+co] = sum_kh  x_row(h + kh*dil - pad) . T[kh, :, w*Cout+co].
    Built once at trace time from tiny weights (pure wrapper-side glue).
    """
    KH, KW, Cin, Cout = w_hwio.shape
    t = jnp.zeros((KH, W * Cin, Wo * Cout), dtype=jnp.float32)
    w_out = jnp.arange(Wo)
    ci = jnp.arange(Cin)
    co = jnp.arange(Cout)
    for kh in range(KH):
        for kw in range(KW):
            w_in = w_out + kw * dilation - pad                       # (Wo,)
            valid = (w_in >= 0) & (w_in < W)
            rows = jnp.clip(w_in, 0, W - 1)[:, None] * Cin + ci[None, :]   # (Wo, Cin)
            cols = w_out[:, None] * Cout + co[None, :]                      # (Wo, Cout)
            vals = jnp.where(valid[:, None, None],
                             w_hwio[kh, kw].astype(jnp.float32)[None, :, :],
                             0.0)                                           # (Wo, Cin, Cout)
            t = t.at[kh, rows[:, :, None], cols[:, None, :]].add(vals)
    return t.astype(dtype)


def cr_forward(x_nchw, weight_oihw, *, kernel_size, dilation=1, padding=None,
               compute_dtype=None):
    """Conv2d(stride=1, bias=False) + ReLU, matching the PyTorch CR module.

    compute_dtype: dtype fed to the MXU (accumulation stays f32).  Pass
                   jnp.bfloat16 on v6e/v7x for the fast MXU path; default None
                   keeps the input dtype (exact f32 semantics of the module).
    """
    if padding is None:
        padding = kernel_size // 2

    N, Cin, H, W = x_nchw.shape
    Cout, Cin_w, KH, KW = weight_oihw.shape
    assert Cin_w == Cin and KH == kernel_size and KW == kernel_size, \
        "CR uses a square kernel with matching in_channels (stride 1)"

    Ho = H + 2 * padding - dilation * (KH - 1)
    Wo = W + 2 * padding - dilation * (KW - 1)
    assert Ho > 0 and Wo > 0

    out_dtype = x_nchw.dtype
    cdt = jnp.dtype(out_dtype if compute_dtype is None else compute_dtype)

    # Glue: NCHW -> (N, H, W*Cin).  The only full-tensor HBM pass in the
    # wrapper (no jnp.pad).  In an NHWC-native pipeline even this transpose
    # would disappear.
    x = jnp.transpose(x_nchw, (0, 2, 3, 1)).reshape(N, H, W * Cin)

    # OIHW -> HWIO, then fold column taps + column padding into T.
    w_hwio = jnp.transpose(weight_oihw, (2, 3, 1, 0))
    t = _pack_weights(w_hwio, W=W, Wo=Wo, pad=padding, dilation=dilation, dtype=cdt)

    # Row-padding layout inside the scratch: interior starts at a sublane-tile
    # aligned offset so the in-kernel copy is an unmasked row-aligned store.
    row_start = ((padding + 7) // 8) * 8
    scratch_rows = row_start + H + padding

    kernel = functools.partial(_cr_kernel, row_start=row_start,
                               pad=padding, dilation=dilation)

    out = pl.pallas_call(
        kernel,
        out_shape=jax.ShapeDtypeStruct((N, Ho, Wo * Cout), out_dtype),
        grid_spec=pltpu.PrefetchScalarGridSpec(
            num_scalar_prefetch=0,
            grid=(N,),
            in_specs=[
                pl.BlockSpec((1, H, W * Cin), lambda n: (n, 0, 0)),
                # Constant index_map: weights are DMA'd once and stay resident.
                pl.BlockSpec((KH, W * Cin, Wo * Cout), lambda n: (0, 0, 0)),
            ],
            out_specs=pl.BlockSpec((1, Ho, Wo * Cout), lambda n: (n, 0, 0)),
            scratch_shapes=[pltpu.VMEM((scratch_rows, W * Cin), x.dtype)],
        ),
        compiler_params=pltpu.CompilerParams(
            dimension_semantics=("parallel",),
            vmem_limit_bytes=32 * 1024 * 1024),
    )(x, t)

    # Glue: (N, Ho, Wo*Cout) -> NCHW to match the PyTorch module's convention.
    out = out.reshape(N, Ho, Wo, Cout)
    return jnp.transpose(out, (0, 3, 1, 2))


def _reference(x_nchw, weight_oihw, *, kernel_size, dilation=1, padding=None):
    if padding is None:
        padding = kernel_size // 2
    y = jax.lax.conv_general_dilated(
        x_nchw, weight_oihw,
        window_strides=(1, 1),
        padding=((padding, padding), (padding, padding)),
        rhs_dilation=(dilation, dilation),
        dimension_numbers=("NCHW", "OIHW", "NCHW"))
    return jnp.maximum(y, 0.0)


if __name__ == "__main__":
    key = jax.random.PRNGKey(0)
    kx, kw = jax.random.split(key)

    # Small shapes consistent with the module: CR(in=4, out=8, kernel_size=3).
    N, Cin, H, W = 2, 4, 16, 16
    Cout, K = 8, 3

    x = jax.random.normal(kx, (N, Cin, H, W), dtype=jnp.float32)
    fan_in = Cin * K * K
    weight = jax.random.normal(kw, (Cout, Cin, K, K), dtype=jnp.float32) * (fan_in ** -0.5)

    # f32 path (exact module semantics).
    out = jax.block_until_ready(cr_forward(x, weight, kernel_size=K, dilation=1))
    ref = _reference(x, weight, kernel_size=K, dilation=1)
    assert out.shape == ref.shape == (N, Cout, H, W)
    assert jnp.allclose(out, ref, atol=1e-4, rtol=1e-4), "f32 mismatch vs lax.conv reference"

    # Dilated path (exercises the padded-row / banded-weight logic).
    out_d2 = jax.block_until_ready(cr_forward(x, weight, kernel_size=K, dilation=2))
    ref_d2 = _reference(x, weight, kernel_size=K, dilation=2)
    assert out_d2.shape == ref_d2.shape
    assert jnp.allclose(out_d2, ref_d2, atol=1e-4, rtol=1e-4), "dilated mismatch vs reference"

    # bf16-operand MXU path (v6e/v7x fast path), f32 accumulation.
    out_bf16 = jax.block_until_ready(
        cr_forward(x, weight, kernel_size=K, dilation=1, compute_dtype=jnp.bfloat16))
    assert jnp.allclose(out_bf16, ref, atol=1e-1, rtol=1e-1), "bf16 path diverged"

    print("KERNEL_OK")
</pallas_src>

<mosaic_0001>
module attributes {stable_mosaic.version = 11 : i64} {
  func.func @_cr_kernel(%arg0: i32, %arg1: memref<1x16x64xf32, #tpu.memory_space<vmem>>, %arg2: memref<3x64x128xf32, #tpu.memory_space<vmem>>, %arg3: memref<1x16x128xf32, #tpu.memory_space<vmem>>, %arg4: memref<25x64xf32, #tpu.memory_space<vmem>>) attributes {dimension_semantics = [#tpu.dimension_semantics<parallel>], iteration_bounds = array<i64: 2>, scalar_prefetch = 0 : i64, scratch_operands = 1 : i64, tpu.core_type = #tpu.core_type<tc>, window_params = [{transform_indices = @transform_0, window_bounds = array<i64: 1, 16, 64>}, {pipeline_mode = #tpu.pipeline_mode<synchronous>, transform_indices = @transform_1, window_bounds = array<i64: 3, 64, 128>}, {transform_indices = @transform_2, window_bounds = array<i64: 1, 16, 128>}]} {
    %cst = arith.constant 0.000000e+00 : f32
    %0 = vector.broadcast %cst : f32 to vector<25x64xf32>
    %c0 = arith.constant 0 : index
    %c0_0 = arith.constant 0 : index
    %1 = vector.load %arg4[%c0, %c0_0] : memref<25x64xf32, #tpu.memory_space<vmem>>, vector<25x64xf32>
    tpu.vector_store %arg4[%c0, %c0_0], %0 {strides = array<i32>} : memref<25x64xf32, #tpu.memory_space<vmem>>, vector<25x64xf32>,
    %c0_1 = arith.constant 0 : index
    %c0_2 = arith.constant 0 : index
    %c0_3 = arith.constant 0 : index
    %2 = vector.load %arg1[%c0_1, %c0_2, %c0_3] : memref<1x16x64xf32, #tpu.memory_space<vmem>>, vector<1x16x64xf32>
    %3 = vector.shape_cast %2 : vector<1x16x64xf32> to vector<16x64xf32>
    %c8 = arith.constant 8 : index
    %c0_4 = arith.constant 0 : index
    %4 = vector.load %arg4[%c8, %c0_4] : memref<25x64xf32, #tpu.memory_space<vmem>>, vector<16x64xf32>
    tpu.vector_store %arg4[%c8, %c0_4], %3 {strides = array<i32>} : memref<25x64xf32, #tpu.memory_space<vmem>>, vector<16x64xf32>,
    %cst_5 = arith.constant 0.000000e+00 : f32
    %5 = vector.broadcast %cst_5 : f32 to vector<16x128xf32>
    %c7 = arith.constant 7 : index
    %c0_6 = arith.constant 0 : index
    %6 = vector.load %arg4[%c7, %c0_6] : memref<25x64xf32, #tpu.memory_space<vmem>>, vector<16x64xf32>
    %c0_7 = arith.constant 0 : index
    %c0_8 = arith.constant 0 : index
    %c0_9 = arith.constant 0 : index
    %7 = vector.load %arg2[%c0_7, %c0_8, %c0_9] : memref<3x64x128xf32, #tpu.memory_space<vmem>>, vector<1x64x128xf32>
    %8 = vector.shape_cast %7 : vector<1x64x128xf32> to vector<64x128xf32>
    %cst_10 = arith.constant dense<0.000000e+00> : vector<16x128xf32>
    %9 = tpu.matmul %6, %8, %cst_10 {dimension_numbers = #tpu.dot_dimension_numbers<[1], [0], [0], [1], [0, 0, 1, 1], [], []>} : vector<16x64xf32>, vector<64x128xf32>, vector<16x128xf32> -> vector<16x128xf32>
    %10 = arith.addf %5, %9 : vector<16x128xf32>
    %c8_11 = arith.constant 8 : index
    %c0_12 = arith.constant 0 : index
    %11 = vector.load %arg4[%c8_11, %c0_12] : memref<25x64xf32, #tpu.memory_space<vmem>>, vector<16x64xf32>
    %c1 = arith.constant 1 : index
    %c0_13 = arith.constant 0 : index
    %c0_14 = arith.constant 0 : index
    %12 = vector.load %arg2[%c1, %c0_13, %c0_14] : memref<3x64x128xf32, #tpu.memory_space<vmem>>, vector<1x64x128xf32>
    %13 = vector.shape_cast %12 : vector<1x64x128xf32> to vector<64x128xf32>
    %cst_15 = arith.constant dense<0.000000e+00> : vector<16x128xf32>
    %14 = tpu.matmul %11, %13, %cst_15 {dimension_numbers = #tpu.dot_dimension_numbers<[1], [0], [0], [1], [0, 0, 1, 1], [], []>} : vector<16x64xf32>, vector<64x128xf32>, vector<16x128xf32> -> vector<16x128xf32>
    %15 = arith.addf %10, %14 : vector<16x128xf32>
    %c9 = arith.constant 9 : index
    %c0_16 = arith.constant 0 : index
    %16 = vector.load %arg4[%c9, %c0_16] : memref<25x64xf32, #tpu.memory_space<vmem>>, vector<16x64xf32>
    %c2 = arith.constant 2 : index
    %c0_17 = arith.constant 0 : index
    %c0_18 = arith.constant 0 : index
    %17 = vector.load %arg2[%c2, %c0_17, %c0_18] : memref<3x64x128xf32, #tpu.memory_space<vmem>>, vector<1x64x128xf32>
    %18 = vector.shape_cast %17 : vector<1x64x128xf32> to vector<64x128xf32>
    %cst_19 = arith.constant dense<0.000000e+00> : vector<16x128xf32>
    %19 = tpu.matmul %16, %18, %cst_19 {dimension_numbers = #tpu.dot_dimension_numbers<[1], [0], [0], [1], [0, 0, 1, 1], [], []>} : vector<16x64xf32>, vector<64x128xf32>, vector<16x128xf32> -> vector<16x128xf32>
    %20 = arith.addf %15, %19 : vector<16x128xf32>
    %cst_20 = arith.constant 0.000000e+00 : f32
    %21 = vector.broadcast %cst_20 : f32 to vector<16x128xf32>
    %22 = arith.maximumf %20, %21 : vector<16x128xf32>
    %c0_21 = arith.constant 0 : index
    %c0_22 = arith.constant 0 : index
    %c0_23 = arith.constant 0 : index
    %23 = vector.load %arg3[%c0_21, %c0_22, %c0_23] : memref<1x16x128xf32, #tpu.memory_space<vmem>>, vector<1x16x128xf32>
    %24 = vector.shape_cast %23 : vector<1x16x128xf32> to vector<16x128xf32>
    %25 = vector.shape_cast %22 : vector<16x128xf32> to vector<1x16x128xf32>
    tpu.vector_store %arg3[%c0_21, %c0_22, %c0_23], %25 {strides = array<i32>} : memref<1x16x128xf32, #tpu.memory_space<vmem>>, vector<1x16x128xf32>,
    return
  }
  func.func @transform_0(%arg0: i32) -> (i32, i32, i32) {
    %c0_i32 = arith.constant 0 : i32
    %c0_i32_0 = arith.constant 0 : i32
    %c0_i32_1 = arith.constant 0 : i32
    return %arg0, %c0_i32, %c0_i32_0 : i32, i32, i32
  }
  func.func @transform_1(%arg0: i32) -> (i32, i32, i32) {
    %c0_i32 = arith.constant 0 : i32
    %c0_i32_0 = arith.constant 0 : i32
    %c0_i32_1 = arith.constant 0 : i32
    %c0_i32_2 = arith.constant 0 : i32
    return %c0_i32, %c0_i32_0, %c0_i32_1 : i32, i32, i32
  }
  func.func @transform_2(%arg0: i32) -> (i32, i32, i32) {
    %c0_i32 = arith.constant 0 : i32
    %c0_i32_0 = arith.constant 0 : i32
    %c0_i32_1 = arith.constant 0 : i32
    return %arg0, %c0_i32, %c0_i32_0 : i32, i32, i32
  }
}

</mosaic_0001>

<bundles_post_ra>
// kernel: tpu_custom_call.1
= control target key start
LH: loop header
LB: loop body
LE: loop exit
PB: predicated region body
PF: predicated region fallthrough
CT: control target
= control target key end

     0   :  { %7 = vsyncpa [#allocation4], 0  ;;  %s1087_s0 = inlined_call_operand.hbm [shape: f32[2,16,64], index: 0, kind: input, shape index: {}]   ;;  %s1088_s1 = inlined_call_operand.hbm [shape: f32[3,64,128], index: 1, kind: input, shape index: {}]   ;;  %s1089_s2 = inlined_call_operand.hbm [shape: f32[2,16,128], index: 2, kind: output, shape index: {}]  }
   0x1   :  { %9 = vsyncpa [#allocation4 + $0x1], 0 }
   0x2   :  { %10 = vsyncpa [#allocation7], 0 }
   0x3   :  { %11 = vsyncpa [#allocation5], 0 }
   0x4   :  { %13 = vsyncpa [#allocation5 + $0x1], 0  ;;  %s885_s9 = smov 0   ;;  %s887_s10 = smov 0  }
   0x5   :  { %s889_s11 = smov 0   ;;  %s891_s12 = smov 0  }
   0x6 LB: > { %s906_s13 = sadd.s32 4294967295, %s860_s12   ;;  %s565_s14 = sadd.s32 4294967294, %s860_s12   ;;  %s860_s12 = sphi %s891_s12, %s1111_s12   ;;  %s856_s11 = sphi %s889_s11, %s1110_s11   ;;  %s852_s10 = sphi %s887_s10, %s1109_s10   ;;  %s848_s9 = sphi %s885_s9, %s1108_s9  }
   0x7   : > { %p39_p0 = scmp.ne.s32.totalorder %s852_s10, %s848_s9  ;;  %p1090_p1 = scmp.eq.s32.totalorder %s906_s13, 0 }
   0x8   : > { %p90_p3 = scmp.eq.s32.totalorder %s565_s14, 1  ;;  %p566_p5 = scmp.ge.s32.totalorder %s860_s12, 1 }
   0x9   : > { %p915_p4 = por %p1090_p1, %p39_p0  ;;  %p97_p7 = scmp.lt.s32.totalorder %s860_s12, 3 }
   0xa   : > { %p920_p6 = por %p90_p3, %p39_p0  ;;  %s862_s18 = smov [#allocation6]  }
   0xb   : > { %s1094_s15 = scalar_select %p915_p4, 1, 0 }
   0xc   : > { %s1095_s16 = scalar_select %p920_p6, 1, 0 }
   0xd   : > { %p925_p8 = pnand %p566_p5, %p97_p7  ;;  %s109_s19 = sshll.u32 %s862_s18, 4  ;;  %s110_s19 = int_to_ptr.vmem [resolvable:$true] %s109_s19 }
   0xe   : > { %s939_s21 = sadd.s32 1, %s860_s12   ;;  %s26_s22 = sadd.s32 1, %s856_s11 }
   0xf   : > { %s1096_s17 = scalar_select %p925_p8, 1, 0 }
  0x10   : > { %p684_p9 = pneg %p925_p8  ;;  %s23_s23 = ssub.s32 %s860_s12, %s939_s21 }
  0x11   : > { %s749_s24 = scalar_lea.vmem %s110_s19, 3072  ;;  %p757_p5 = scmp.lt.s32.totalorder %s110_s19, %s110_s19 }
  0x12   : > { %p934_p11 = pnand %p684_p9, %p1090_p1  ;;  %p750_p13 = scmp.ne.s32.totalorder %s110_s19, %s749_s24 }
  0x13   : > { %p758_p7 = scmp.lt.s32.totalorder %s749_s24, %s749_s24 }
  0x14   : > { %p740_p12 = pneg %p934_p11 }
  0x15   : > { %p759_p10 = por %p758_p7, %p757_p5 }
  0x16   : > { %p752_p0 = pnand %p750_p13, %p740_p12 }
  0x18   : > { %p753_p3 = pneg %p752_p0 }
  0x1a   : > { %p760_p2 = pnand %p759_p10, %p753_p3 }
  0x1c   : > { %763 = shalt.err (!%p760_p2)
}
  0x1d   : > { %s863_s25 = smov 128   ;;  %s864_s26 = smov 8  }
  0x1e   : > { %687 = dma.hbm_to_vmem [thread:$0]  (!%p934_p11), %s1088_s1, 3072, %s110_s19, [#allocation7], %s863_s25, %s863_s25, %s864_s26  }
  0x1f   : > { %p24_p2 = scmp.eq.s32.totalorder %s23_s23, 0  ;;  %p33_p9 = scmp.ne.s32.totalorder %s856_s11, %s852_s10 }
  0x20   : > { %p34_p10 = scmp.eq.s32.totalorder %s860_s12, 0  ;;  %p697_p12 = scmp.lt.s32.totalorder %s860_s12, 2 }
  0x21   : > { %s959_s29 = scalar_select %p24_p2, %s856_s11, %s26_s22  }
  0x22   : > { %p35_p13 = por %p34_p10, %p33_p9  ;;  %p1098_p0 = scmp.eq.s32.totalorder %s906_s13, 1 }
  0x23   : > { %s123_s3 = sand.u32 1, %s856_s11   ;;  %s587_s4 = sshll.u32 %s860_s12, 8 }
  0x24   : > { %p963_p3 = por %p1098_p0, %p33_p9  ;;  %s569_s5 = sshll.u32 %s123_s3, 4 }
  0x25   : > { %s972_s8 = scalar_lea.hbm %s1087_s0, %s587_s4  ;;  %s127_s14 = scalar_lea.vmem [#allocation3], %s569_s5 }
  0x26   : > { %s1099_s30 = scalar_select %p963_p3, 1, 0 }
  0x27   : > { %s134_s18 = sshll.u32 %s127_s14, 4  ;;  %p974_p11 = pnand %p697_p12, %p35_p13  ;;  %s978_s18 = int_to_ptr.vmem [resolvable:$true] %s134_s18 }
  0x28   : > { %s980_s20 = scalar_lea.sflag [#allocation4], %s123_s3  ;;  %s764_s22 = scalar_lea.hbm %s972_s8, 256 }
  0x29   : > { %p765_p5 = scmp.ne.s32.totalorder %s972_s8, %s764_s22  ;;  %p766_p7 = pneg %p974_p11 }
  0x2a   : > { %s769_s27 = scalar_lea.hbm %s1087_s0, 512  ;;  %p770_p10 = scmp.lt.s32.totalorder %s972_s8, %s1087_s0 }
  0x2b   : > { %p767_p2 = pnand %p766_p7, %p765_p5  ;;  %p771_p12 = scmp.lt.s32.totalorder %s769_s27, %s764_s22 }
  0x2d   : > { %p768_p9 = pneg %p767_p2  ;;  %p772_p13 = por %p771_p12, %p770_p10 }
  0x2f   : > { %p773_p0 = pnand %p772_p13, %p768_p9 }
  0x31   : > { %776 = shalt.err (!%p773_p0)
}
  0x32   : > { %s777_s3 = scalar_lea.vmem %s978_s18, 256  ;;  %s865_s5 = smov [#allocation3]  }
  0x33   : > { %p778_p1 = scmp.ne.s32.totalorder %s978_s18, %s777_s3  ;;  %s782_s6 = sshll.u32 %s865_s5, 4  ;;  %s783_s6 = int_to_ptr.vmem [resolvable:$false] %s782_s6 }
  0x34   : > { %s784_s7 = scalar_lea.vmem %s783_s6, 512  ;;  %p785_p2 = scmp.lt.s32.totalorder %s978_s18, %s783_s6 }
  0x35   : > { %p780_p6 = pnand %p778_p1, %p766_p7  ;;  %p786_p3 = scmp.lt.s32.totalorder %s784_s7, %s777_s3 }
  0x37   : > { %p781_p5 = pneg %p780_p6  ;;  %p787_p4 = por %p786_p3, %p785_p2 }
  0x39   : > { %p788_p8 = pnand %p787_p4, %p781_p5 }
  0x3b   : > { %791 = shalt.err (!%p788_p8)
}
  0x3c   : > { %691 = dma.hbm_to_vmem [thread:$0]  (!%p974_p11), %s972_s8, 256, %s978_s18, %s980_s20, %s863_s25, %s863_s25, %s864_s26  }
  0x3d   : > { %p1101_p1 = scmp.ne.s32.totalorder %s1096_s17, 0 }
  0x3e   : > { %s1007_s14 = sand.u32 (!%p1101_p1), 1, %s852_s10   ;;  %p1102_p4 = scmp.ne.s32.totalorder (!%p1101_p1), %s1094_s15, 0 }
  0x3f   : > { %146 = sbr.rel (%p1101_p1) target bundleno = 320 (0x140), region = 28  ;;  %s573_s22 = sshll.u32 (!%p1101_p1), %s1007_s14, 4 }
  0x40   : > { %s149_s23 = scalar_lea.sflag (!%p1101_p1), [#allocation4], %s1007_s14  ;;  %s1013_s19 = scalar_lea.vmem (!%p1101_p1), [#allocation3], %s573_s22 }
  0x44   : > { %835 = dma.done.wait (%p1102_p4), %s149_s23, 256  }
  0x45   : > { %837 = vsyncadd (%p1102_p4), %s149_s23, 4294967040  ;;  %p1103_p6 = scmp.eq.s32.totalorder %s906_s13, 0 }
  0x47   : > { %839 = dma.done.wait (%p1103_p6), [#allocation7], 3072   ;;  %p1104_p8 = pmov %p1103_p6 }
  0x48   : > { %vm177_vm0 = vcmask 523264   ;;  %vm181_vm1 = vcmask 516096   ;;  %v866_v0 = vmov 0.0   ;;  %v207_v1 = vld [vmem:[#allocation6 + $0x78] sm:$0xff]  ;;  %v206_v3 = vld [vmem:[#allocation6 + $0x70] sm:$0xff]  ;;  %v205_v5 = vld [vmem:[#allocation6 + $0x68] sm:$0xff] }
  0x49   : > { %841 = vsyncadd (%p1104_p8), [#allocation7], 4294964224  ;;  %179 = vst.msk [vmem:[#allocation2 + $0x8] sm:$0xff] %vm177_vm0, %v866_v0  ;;  %v196_v2 = vld [vmem:[#allocation6 + $0x38] sm:$0xff]  ;;  %619 = vmatprep.subr.mxu0 %v207_v1  ;;  %v195_v4 = vld [vmem:[#allocation6 + $0x30] sm:$0xff]  ;;  %s176_s15 = scalar_lea.vmem [#allocation8], %s573_s22 }
  0x4a   : > { %178 = vst.msk [vmem:[#allocation2] sm:$0xff] %vm177_vm0, %v866_v0  ;;  %180 = vst.msk [vmem:[#allocation2 + $0x10] sm:$0xff] %vm177_vm0, %v866_v0  ;;  %638 = vmatprep.subr.mxu1 %v196_v2  ;;  %620 = vmatpush3.msra.mxu0 %v207_v1  ;;  %v194_v6 = vld [vmem:[#allocation6 + $0x28] sm:$0xff]  ;;  %v204_v7 = vld [vmem:[#allocation6 + $0x60] sm:$0xff]  ;;  %s482_s17 = sshll.u32 %s176_s15, 4  ;;  %s588_s25 = sshll.u32 %s906_s13, 8  ;;  %s1039_s17 = int_to_ptr.vmem [resolvable:$true] %s482_s17 }
  0x4b   : > { %182 = vst.msk [vmem:[#allocation2 + $0x18] sm:$0x1] %vm181_vm1, %v866_v0  ;;  %639 = vmatpush3.msra.mxu1 %v196_v2  ;;  %621 = vmatprep.subr.mxu0 %v206_v3  ;;  %v193_v8 = vld [vmem:[#allocation6 + $0x20] sm:$0xff]  ;;  %v184_v10 = vld [vmem:[%s1013_s19 + $0x8] sm:$0xff]  ;;  %v202_v13 = vld [vmem:[#allocation6 + $0x50] sm:$0xff]  ;;  %s1044_s18 = scalar_lea.hbm %s1089_s2, %s588_s25  ;;  %s469_s20 = scalar_lea.sflag [#allocation5], %s1007_s14 }
  0x4c   : > { %640 = vmatprep.subr.mxu1 %v195_v4  ;;  %622 = vmatpush3.msra.mxu0 %v206_v3  ;;  %v183_v9 = vld [vmem:[%s1013_s19] sm:$0xff]  ;;  %v203_v11 = vld [vmem:[#allocation6 + $0x58] sm:$0xff]  ;;  %186 = vst.msk [vmem:[#allocation2 + $0x10] sm:$0xff] %vm177_vm0, %v184_v10  ;;  %v201_v15 = vld [vmem:[#allocation6 + $0x48] sm:$0xff]  ;;  %s792_s24 = scalar_lea.vmem %s1039_s17, 256  ;;  %p1105_p11 = scmp.ne.s32.totalorder %s1099_s30, 0 }
  0x4d   : > { %641 = vmatpush3.msra.mxu1 %v195_v4  ;;  %623 = vmatprep.subr.mxu0 %v205_v5  ;;  %v192_v12 = vld [vmem:[#allocation6 + $0x18] sm:$0xff]  ;;  %185 = vst.msk [vmem:[#allocation2 + $0x8] sm:$0xff] %vm177_vm0, %v183_v9  ;;  %v191_v14 = vld [vmem:[#allocation6 + $0x10] sm:$0xff]  ;;  %v190_v16 = vld [vmem:[#allocation6 + $0x8] sm:$0xff]  ;;  %p793_p3 = scmp.ne.s32.totalorder %s1039_s17, %s792_s24  ;;  %s867_s13 = smov [#allocation8]  }
  0x4e   : > { %642 = vmatprep.subr.mxu1 %v194_v6  ;;  %624 = vmatpush3.msra.mxu0 %v205_v5  ;;  %v200_v17 = vld [vmem:[#allocation6 + $0x40] sm:$0xff]  ;;  %v380_v23 = vld [vmem:[#allocation6 + $0xb8] sm:$0xff]  ;;  %v379_v25 = vld [vmem:[#allocation6 + $0xb0] sm:$0xff]  ;;  %s796_s27 = sshll.u32 %s867_s13, 4  ;;  %s797_s27 = int_to_ptr.vmem [resolvable:$false] %s796_s27 }
  0x4f   : > { %643 = vmatpush3.msra.mxu1 %v194_v6  ;;  %625 = vmatprep.subr.mxu0 %v204_v7  ;;  %v189_v18 = vld [vmem:[#allocation6] sm:$0xff]  ;;  %v378_v26 = vld [vmem:[#allocation6 + $0xa8] sm:$0xff]  ;;  %v376_v28 = vld [vmem:[#allocation6 + $0x98] sm:$0xff]  ;;  %p794_p7 = pnand %p793_p3, %p1105_p11  ;;  %s798_s28 = scalar_lea.vmem %s797_s27, 512 }
  0x50   : > { %644 = vmatprep.subr.mxu1 %v193_v8  ;;  %626 = vmatpush3.msra.mxu0 %v204_v7  ;;  %v377_v27 = vld [vmem:[#allocation6 + $0xa0] sm:$0xff]  ;;  %v375_v29 = vld [vmem:[#allocation6 + $0x90] sm:$0xff]  ;;  %v374_v30 = vld [vmem:[#allocation6 + $0x88] sm:$0xff]  ;;  %p799_p10 = scmp.lt.s32.totalorder %s1039_s17, %s797_s27  ;;  %p800_p12 = scmp.lt.s32.totalorder %s798_s28, %s792_s24 }
  0x51   : > { %645 = vmatpush3.msra.mxu1 %v193_v8  ;;  %627 = vmatprep.subr.mxu0 %v203_v11  ;;  %v373_v31 = vld [vmem:[#allocation6 + $0x80] sm:$0xff]  ;;  %p795_p9 = pneg %p794_p7 }
  0x52   : > { %646 = vmatprep.subr.mxu1 %v192_v12  ;;  %628 = vmatpush3.msra.mxu0 %v203_v11  ;;  %p801_p13 = por %p800_p12, %p799_p10 }
  0x53   : > { %647 = vmatpush3.msra.mxu1 %v192_v12  ;;  %629 = vmatprep.subr.mxu0 %v202_v13  ;;  %v198_v21 = vld [vmem:[#allocation2 + $0x10] sm:$0xff] }
  0x54   : > { %648 = vmatprep.subr.mxu1 %v191_v14  ;;  %630 = vmatpush3.msra.mxu0 %v202_v13  ;;  %v197_v19 = vld [vmem:[#allocation2 + $0x8] sm:$0xff]  ;;  %v371_v32 = vld [vmem:[#allocation2 + $0x11] sm:$0xff]  ;;  %p802_p0 = pnand %p801_p13, %p795_p9 }
  0x55   : > { %649 = vmatpush3.msra.mxu1 %v191_v14  ;;  %631 = vmatprep.subr.mxu0 %v201_v15  ;;  %v187_v20 = vld [vmem:[#allocation2 + $0x7] sm:$0xff]  ;;  %v188_v22 = vld [vmem:[#allocation2 + $0xf] sm:$0xff] }
  0x56   : > { %650 = vmatprep.subr.mxu1 %v190_v16  ;;  %632 = vmatpush3.msra.mxu0 %v201_v15  ;;  %v370_v24 = vld [vmem:[#allocation2 + $0x9] sm:$0xff] }
  0x57   : > { %651 = vmatpush3.msra.mxu1 %v190_v16  ;;  %633 = vmatprep.subr.mxu0 %v200_v17 }
  0x58   : > { %652 = vmatprep.subr.mxu1 %v189_v18  ;;  %634 = vmatpush3.msra.mxu0 %v200_v17 }
  0x59   : > { %635 = vmatprep.mubr.msk.f32.mxu0 %vm177_vm0, %v197_v19  ;;  %653 = vmatpush3.msra.mxu1 %v189_v18 }
  0x5a   : > { %654 = vmatprep.mubr.msk.f32.mxu1 %vm177_vm0, %v187_v20  ;;  %636 = vmatmul.mubr.msk.f32.vlgmr.msra.gmra.mxu0 %vm177_vm0, %v198_v21 }
  0x5b   : > { %655 = vmatmul.mubr.msk.f32.vlgmr.msra.gmra.mxu1 %vm177_vm0, %v188_v22  ;;  %657 = vmatprep.subr.mxu0 %v380_v23 }
  0x5c   : > { %673 = vmatprep.mubr.msk.f32.mxu0 %vm177_vm0, %v370_v24  ;;  %658 = vmatpush3.msra.mxu0 %v380_v23 }
  0x5d   : > { %659 = vmatprep.subr.mxu0 %v379_v25 }
  0x5e   : > { %660 = vmatpush3.msra.mxu0 %v379_v25 }
  0x5f   : > { %661 = vmatprep.subr.mxu0 %v378_v26 }
  0x60   : > { %662 = vmatpush3.msra.mxu0 %v378_v26 }
  0x61   : > { %663 = vmatprep.subr.mxu0 %v377_v27 }
  0x62   : > { %664 = vmatpush3.msra.mxu0 %v377_v27 }
  0x63   : > { %665 = vmatprep.subr.mxu0 %v376_v28 }
  0x64   : > { %666 = vmatpush3.msra.mxu0 %v376_v28 }
  0x65   : > { %667 = vmatprep.subr.mxu0 %v375_v29 }
  0x66   : > { %668 = vmatpush3.msra.mxu0 %v375_v29 }
  0x67   : > { %669 = vmatprep.subr.mxu0 %v374_v30 }
  0x68   : > { %670 = vmatpush3.msra.mxu0 %v374_v30 }
  0x69   : > { %671 = vmatprep.subr.mxu0 %v373_v31 }
  0x6a   : > { %672 = vmatpush3.msra.mxu0 %v373_v31 }
  0x6b   : > { %674 = vmatmul.mubr.msk.f32.vlgmr.msra.gmra.mxu0 %vm177_vm0, %v371_v32 }
 0x11a   : > { %v637_v33 = vpop.f32.mrf.mxu0 }
 0x11b   : > { %v656_v34 = vpop.f32.mrf.mxu1 }
 0x11c   : > { %v280_v35 = vpop.f32.mrf.mxu0  ;;  %v367_v37 = vadd.f32 %v656_v34, %v637_v33 }
 0x11d   : > { %v361_v36 = vpop.f32.mrf.mxu1 }
 0x11e   : > { %v362_v39 = vadd.f32 %v361_v36, %v280_v35 }
 0x12b   : > { %v675_v38 = vpop.f32.mrf.mxu0 }
 0x12c   : > { %v463_v40 = vadd.f32 %v675_v38, %v367_v37 }
 0x12d   : > { %v453_v41 = vpop.f32.mrf.mxu0 }
 0x12e   : > { %v465_v42 = vmax.f32 %v463_v40, 0.0  ;;  %v462_v43 = vadd.f32 %v453_v41, %v362_v39 }
 0x130   : > { %467 = vst [vmem:[%s176_s15 + $0x8] sm:$0xff] %v465_v42  ;;  %v464_v44 = vmax.f32 %v462_v43, 0.0 }
 0x132   : > { %466 = vst [vmem:[%s176_s15] sm:$0xff] %v464_v44 }
 0x133   : > { %805 = shalt.err (!%p802_p0)
}
 0x134   : > { %s806_s4 = scalar_lea.hbm %s1044_s18, 256  ;;  %s810_s6 = scalar_lea.hbm %s1089_s2, 512 }
 0x135   : > { %p807_p5 = scmp.ne.s32.totalorder %s1044_s18, %s806_s4  ;;  %p811_p4 = scmp.lt.s32.totalorder %s1044_s18, %s1089_s2 }
 0x136   : > { %p812_p6 = scmp.lt.s32.totalorder %s810_s6, %s806_s4 }
 0x137   : > { %p808_p2 = pnand %p807_p5, %p1105_p11 }
 0x138   : > { %p813_p8 = por %p812_p6, %p811_p4 }
 0x139   : > { %p809_p1 = pneg %p808_p2 }
 0x13b   : > { %p814_p3 = pnand %p813_p8, %p809_p1 }
 0x13d   : > { %817 = shalt.err (!%p814_p3)
}
 0x13e   : > { %s868_s23 = smov 128   ;;  %s869_s19 = smov 8  }
 0x13f   : > { %682 = dma.vmem_to_hbm [thread:$0]  (%p1105_p11), %s1039_s17, 256, %s1044_s18, %s469_s20, %s868_s23, %s868_s23, %s869_s19  }
 0x140 PF: > { %s497_s15 = sand.u32 1, %s848_s9   ;;  %p1106_p7 = scmp.ne.s32.totalorder %s1095_s16, 0 }
 0x141   : > { %p1107_p9 = scmp.ge.s32.totalorder %s860_s12, 2  ;;  %s498_s25 = scalar_lea.sflag [#allocation5], %s497_s15 }
 0x143   : > { %p693_p10 = pnand %p1107_p9, %p1106_p7 }
 0x145   : > { %p694_p12 = pneg %p693_p10 }
 0x147   : > { %843 = dma.done.wait (%p694_p12), %s498_s25, 256  }
 0x148   : > { %845 = vsyncadd (%p694_p12), %s498_s25, 4294967040  ;;  %p16_p13 = scmp.ge.s32.totalorder %s939_s21, 4   ;;  %s1108_s9 = smov %s852_s10 }
 0x149   : > { %s1109_s10 = smov %s856_s11  ;;  %s1110_s11 = smov %s959_s29 }
 0x14a   : > { %s1111_s12 = smov %s939_s21  ;;  %18 = sbr.rel (!%p16_p13) target bundleno = 6 (0x6), region = 79 }
 0x14f   :  { %503 = vsyncpa [#allocation4], 1 }
 0x150   :  { %505 = vsyncpa [#allocation4 + $0x1], 1 }
 0x151   :  { %506 = vsyncpa [#allocation7], 1 }
 0x152   :  { %507 = vsyncpa [#allocation5], 1 }
 0x153   :  { %509 = vsyncpa [#allocation5 + $0x1], 1 }

</bundles_post_ra>
